<compile_context>
chip_gen: v6e
topology: v6e:2x2x1
jax: 0.10.0
libtpu: 0.0.40
codegen_flags: <defaults>
</compile_context>

<pallas_src>
import functools

import jax
import jax.numpy as jnp
from jax.experimental import pallas as pl
from jax.experimental.pallas import tpu as pltpu


def _sigmoid(x):
    # One EUP op (tanh) instead of exp+divide; mathematically equal to sigmoid.
    return 0.5 * (jnp.tanh(0.5 * x) + 1.0)


# ----------------------------------------------------------------------------
# Row-tiled matmul + bias:  (N, K) @ (K, M) + (1, M) -> (N, M)
# Used for the hoisted LSTM input projections and the final Linear layer.
# ----------------------------------------------------------------------------
def _matmul_bias_kernel(x_ref, w_ref, b_ref, o_ref):
    o_ref[...] = (
        jnp.dot(x_ref[...], w_ref[...], preferred_element_type=jnp.float32)
        + b_ref[...]
    ).astype(o_ref.dtype)


def _pick_row_tile(n, max_tile=256):
    """Largest row tile <= max_tile that divides n (multiple of 8 if < n)."""
    if n <= max_tile:
        return n
    for t in range(max_tile, 7, -8):
        if n % t == 0:
            return t
    return n


def matmul_bias(x_2d, w_t, bias):
    """x_2d: (N, K), w_t: (K, M), bias: (1, M) -> (N, M) in f32."""
    N, K = x_2d.shape
    M = w_t.shape[1]
    tile_n = _pick_row_tile(N)
    return pl.pallas_call(
        _matmul_bias_kernel,
        out_shape=jax.ShapeDtypeStruct((N, M), jnp.float32),
        grid_spec=pltpu.PrefetchScalarGridSpec(
            num_scalar_prefetch=0,
            grid=(N // tile_n,),
            in_specs=[
                pl.BlockSpec((tile_n, K), lambda i: (i, 0)),
                pl.BlockSpec((K, M), lambda i: (0, 0)),
                pl.BlockSpec((1, M), lambda i: (0, 0)),
            ],
            out_specs=pl.BlockSpec((tile_n, M), lambda i: (i, 0)),
        ),
        compiler_params=pltpu.CompilerParams(
            dimension_semantics=("parallel",),
            vmem_limit_bytes=48 * 1024 * 1024,
        ),
    )(x_2d, w_t, bias)


# ----------------------------------------------------------------------------
# LSTM recurrence over precomputed input gates.
#   gx:   (T, B, 4H)  = x @ W_ih^T + (b_ih + b_hh), time-major
#   whh:  (H, 4H)     = W_hh^T
# Output: (T, B, H) hidden states.  Gate order matches PyTorch: i, f, g, o.
# Grid = (batch_tiles, time_chunks); h/c carried in VMEM scratch across the
# time axis, re-initialized when the time index restarts (new batch tile).
# ----------------------------------------------------------------------------
def _lstm_recurrent_kernel(gx_ref, whh_ref, out_ref, h_ref, c_ref,
                           *, hidden, time_chunk):
    t_blk = pl.program_id(1)

    @pl.when(t_blk == 0)
    def _():
        h_ref[...] = jnp.zeros_like(h_ref)
        c_ref[...] = jnp.zeros_like(c_ref)

    H = hidden
    # Hoist recurrent weights: loaded from VMEM into vregs once per chunk.
    whh = whh_ref[...]

    def step(t, carry):
        h, c = carry
        # (B_tile, 4H): precomputed input gates + recurrent contribution.
        gates = gx_ref[t] + jnp.dot(h, whh, preferred_element_type=jnp.float32)
        i_g = _sigmoid(gates[:, 0 * H:1 * H])
        f_g = _sigmoid(gates[:, 1 * H:2 * H])
        g_g = jnp.tanh(gates[:, 2 * H:3 * H])
        o_g = _sigmoid(gates[:, 3 * H:4 * H])
        c = f_g * c + i_g * g_g
        h = o_g * jnp.tanh(c)
        out_ref[t] = h.astype(out_ref.dtype)
        return (h, c)

    # Carry h/c as values inside the chunk; touch scratch only at the borders.
    h_fin, c_fin = jax.lax.fori_loop(
        0, time_chunk, step, (h_ref[...], c_ref[...]), unroll=True)
    h_ref[...] = h_fin
    c_ref[...] = c_fin


def _pick_time_chunk(T, target=16):
    tc = min(T, target)
    while T % tc:
        tc -= 1
    return tc


def lstm_recurrence(gx_tbg, w_hh_t, *, time_chunk=None, batch_tile=None):
    """gx_tbg: (T, B, 4H) time-major precomputed gates. Returns (T, B, H)."""
    T, B, G = gx_tbg.shape
    H = w_hh_t.shape[0]
    assert G == 4 * H and w_hh_t.shape == (H, 4 * H)

    if time_chunk is None:
        time_chunk = _pick_time_chunk(T)
    assert T % time_chunk == 0
    if batch_tile is None:
        batch_tile = B
    assert B % batch_tile == 0
    n_b, n_t = B // batch_tile, T // time_chunk

    kernel = functools.partial(
        _lstm_recurrent_kernel, hidden=H, time_chunk=time_chunk)

    return pl.pallas_call(
        kernel,
        out_shape=jax.ShapeDtypeStruct((T, B, H), jnp.float32),
        grid_spec=pltpu.PrefetchScalarGridSpec(
            num_scalar_prefetch=0,
            grid=(n_b, n_t),
            in_specs=[
                pl.BlockSpec((time_chunk, batch_tile, 4 * H),
                             lambda b, t: (t, b, 0)),
                pl.BlockSpec((H, 4 * H), lambda b, t: (0, 0)),
            ],
            out_specs=pl.BlockSpec((time_chunk, batch_tile, H),
                                   lambda b, t: (t, b, 0)),
            scratch_shapes=[
                pltpu.VMEM((batch_tile, H), jnp.float32),  # h state
                pltpu.VMEM((batch_tile, H), jnp.float32),  # c state
            ],
        ),
        compiler_params=pltpu.CompilerParams(
            # batch tiles independent (megacore split); time is a recurrence.
            dimension_semantics=("parallel", "arbitrary"),
            vmem_limit_bytes=48 * 1024 * 1024,
        ),
    )(gx_tbg, w_hh_t)


# ----------------------------------------------------------------------------
# Parameter construction (mimics nn.LSTM / nn.Linear shapes & init ranges).
# Weights stored pre-transposed so kernels do plain row-major matmuls.
# ----------------------------------------------------------------------------
def init_params(key, d_in, d_out, layers, d_hid):
    params = {"lstm": [], "linear": {}}
    bound = 1.0 / jnp.sqrt(jnp.float32(d_hid))
    k = key
    for layer in range(layers):
        layer_in = d_in if layer == 0 else d_hid
        k, k1, k2, k3, k4 = jax.random.split(k, 5)
        w_ih = jax.random.uniform(k1, (4 * d_hid, layer_in), jnp.float32, -bound, bound)
        w_hh = jax.random.uniform(k2, (4 * d_hid, d_hid), jnp.float32, -bound, bound)
        b_ih = jax.random.uniform(k3, (4 * d_hid,), jnp.float32, -bound, bound)
        b_hh = jax.random.uniform(k4, (4 * d_hid,), jnp.float32, -bound, bound)
        params["lstm"].append({
            "w_ih_t": w_ih.T,                      # (layer_in, 4H)
            "w_hh_t": w_hh.T,                      # (H, 4H)
            "bias": (b_ih + b_hh).reshape(1, -1),  # (1, 4H)
        })
    k, k1, k2 = jax.random.split(k, 3)
    w = jax.random.uniform(k1, (d_out, d_hid), jnp.float32, -bound, bound)
    b = jax.random.uniform(k2, (d_out,), jnp.float32, -bound, bound)
    params["linear"]["w_t"] = w.T                  # (H, d_out)
    params["linear"]["b"] = b.reshape(1, -1)       # (1, d_out)
    return params


# ----------------------------------------------------------------------------
# Full forward: AsrLSTM.forward(x, proj=True), batch_first=True, uni-directional.
# ----------------------------------------------------------------------------
@functools.partial(jax.jit, static_argnames=("proj", "time_chunk"))
def asr_lstm_forward(params, x_btd, proj=True, time_chunk=None):
    """x_btd: (B, T, d_in) batch-first, like PyTorch batch_first=True."""
    B, T, _ = x_btd.shape
    # Single transpose of the (small) input to time-major; all intermediate
    # (T, B, *) activations stay time-major with no further transposes.
    x = jnp.transpose(x_btd, (1, 0, 2))            # (T, B, d_in)
    for lp in params["lstm"]:
        H = lp["w_hh_t"].shape[0]
        # Hoisted input projection: one large MXU matmul over all T*B rows.
        gx = matmul_bias(x.reshape(T * B, -1), lp["w_ih_t"], lp["bias"])
        gx = gx.reshape(T, B, 4 * H)               # free reshape
        x = lstm_recurrence(gx, lp["w_hh_t"], time_chunk=time_chunk)
    if proj:
        w_t = params["linear"]["w_t"]
        b = params["linear"]["b"]
        out2d = matmul_bias(x.reshape(T * B, -1), w_t, b)
        out = out2d.reshape(T, B, w_t.shape[1])
    else:
        out = x
    return jnp.transpose(out, (1, 0, 2))           # back to (B, T, d_out)


# ----------------------------------------------------------------------------
# Pure-JAX reference (sanity check of the Pallas kernels).
# ----------------------------------------------------------------------------
def _ref_forward(params, x_btd, proj=True):
    x = x_btd
    for lp in params["lstm"]:
        H = lp["w_hh_t"].shape[0]
        B = x.shape[0]
        h = jnp.zeros((B, H), jnp.float32)
        c = jnp.zeros((B, H), jnp.float32)

        def step(carry, xt):
            h, c = carry
            gates = xt @ lp["w_ih_t"] + h @ lp["w_hh_t"] + lp["bias"]
            i = jax.nn.sigmoid(gates[:, 0 * H:1 * H])
            f = jax.nn.sigmoid(gates[:, 1 * H:2 * H])
            g = jnp.tanh(gates[:, 2 * H:3 * H])
            o = jax.nn.sigmoid(gates[:, 3 * H:4 * H])
            c = f * c + i * g
            h = o * jnp.tanh(c)
            return (h, c), h

        _, hs = jax.lax.scan(step, (h, c), jnp.transpose(x, (1, 0, 2)))
        x = jnp.transpose(hs, (1, 0, 2))
    if proj:
        x = x @ params["linear"]["w_t"] + params["linear"]["b"]
    return x


if __name__ == "__main__":
    # Small shapes: batch=2, seq=8, d_in=16, d_hid=32, d_out=8, layers=2.
    # time_chunk=4 -> 2 time chunks, exercising the h/c carry across grid steps.
    B, T, D_IN, D_HID, D_OUT, LAYERS = 2, 8, 16, 32, 8, 2

    key = jax.random.PRNGKey(0)
    k_params, k_x = jax.random.split(key)
    params = init_params(k_params, D_IN, D_OUT, LAYERS, D_HID)
    x = jax.random.normal(k_x, (B, T, D_IN), jnp.float32)

    out = asr_lstm_forward(params, x, proj=True, time_chunk=4)
    jax.block_until_ready(out)
    assert out.shape == (B, T, D_OUT), out.shape

    ref = _ref_forward(params, x, proj=True)
    assert jnp.allclose(out, ref, atol=1e-4, rtol=1e-4), "mismatch vs reference"

    print("KERNEL_OK")
</pallas_src>

<mosaic_0001>
module attributes {stable_mosaic.version = 11 : i64} {
  func.func @_matmul_bias_kernel(%arg0: i32, %arg1: memref<16x16xf32, #tpu.memory_space<vmem>>, %arg2: memref<16x128xf32, #tpu.memory_space<vmem>>, %arg3: memref<1x128xf32, #tpu.memory_space<vmem>>, %arg4: memref<16x128xf32, #tpu.memory_space<vmem>>) attributes {dimension_semantics = [#tpu.dimension_semantics<parallel>], iteration_bounds = array<i64: 1>, scalar_prefetch = 0 : i64, scratch_operands = 0 : i64, tpu.core_type = #tpu.core_type<tc>, window_params = [{transform_indices = @transform_0, window_bounds = array<i64: 16, 16>}, {pipeline_mode = #tpu.pipeline_mode<synchronous>, transform_indices = @transform_1, window_bounds = array<i64: 16, 128>}, {pipeline_mode = #tpu.pipeline_mode<synchronous>, transform_indices = @transform_2, window_bounds = array<i64: 1, 128>}, {transform_indices = @transform_3, window_bounds = array<i64: 16, 128>}]} {
    %c0 = arith.constant 0 : index
    %c0_0 = arith.constant 0 : index
    %0 = vector.load %arg1[%c0, %c0_0] : memref<16x16xf32, #tpu.memory_space<vmem>>, vector<16x16xf32>
    %c0_1 = arith.constant 0 : index
    %c0_2 = arith.constant 0 : index
    %1 = vector.load %arg2[%c0_1, %c0_2] : memref<16x128xf32, #tpu.memory_space<vmem>>, vector<16x128xf32>
    %cst = arith.constant dense<0.000000e+00> : vector<16x128xf32>
    %2 = tpu.matmul %0, %1, %cst {dimension_numbers = #tpu.dot_dimension_numbers<[1], [0], [0], [1], [0, 0, 1, 1], [], []>} : vector<16x16xf32>, vector<16x128xf32>, vector<16x128xf32> -> vector<16x128xf32>
    %c0_3 = arith.constant 0 : index
    %c0_4 = arith.constant 0 : index
    %3 = vector.load %arg3[%c0_3, %c0_4] : memref<1x128xf32, #tpu.memory_space<vmem>>, vector<1x128xf32>
    %4 = vector.broadcast %3 : vector<1x128xf32> to vector<16x128xf32>
    %5 = arith.addf %2, %4 : vector<16x128xf32>
    %c0_5 = arith.constant 0 : index
    %c0_6 = arith.constant 0 : index
    %6 = vector.load %arg4[%c0_5, %c0_6] : memref<16x128xf32, #tpu.memory_space<vmem>>, vector<16x128xf32>
    tpu.vector_store %arg4[%c0_5, %c0_6], %5 {strides = array<i32>} : memref<16x128xf32, #tpu.memory_space<vmem>>, vector<16x128xf32>,
    return
  }
  func.func @transform_0(%arg0: i32) -> (i32, i32) {
    %c0_i32 = arith.constant 0 : i32
    %c0_i32_0 = arith.constant 0 : i32
    return %arg0, %c0_i32 : i32, i32
  }
  func.func @transform_1(%arg0: i32) -> (i32, i32) {
    %c0_i32 = arith.constant 0 : i32
    %c0_i32_0 = arith.constant 0 : i32
    %c0_i32_1 = arith.constant 0 : i32
    return %c0_i32, %c0_i32_0 : i32, i32
  }
  func.func @transform_2(%arg0: i32) -> (i32, i32) {
    %c0_i32 = arith.constant 0 : i32
    %c0_i32_0 = arith.constant 0 : i32
    %c0_i32_1 = arith.constant 0 : i32
    return %c0_i32, %c0_i32_0 : i32, i32
  }
  func.func @transform_3(%arg0: i32) -> (i32, i32) {
    %c0_i32 = arith.constant 0 : i32
    %c0_i32_0 = arith.constant 0 : i32
    return %arg0, %c0_i32 : i32, i32
  }
}

module attributes {stable_mosaic.version = 11 : i64} {
  func.func @_matmul_bias_kernel(%arg0: i32, %arg1: memref<16x32xf32, #tpu.memory_space<vmem>>, %arg2: memref<32x128xf32, #tpu.memory_space<vmem>>, %arg3: memref<1x128xf32, #tpu.memory_space<vmem>>, %arg4: memref<16x128xf32, #tpu.memory_space<vmem>>) attributes {dimension_semantics = [#tpu.dimension_semantics<parallel>], iteration_bounds = array<i64: 1>, scalar_prefetch = 0 : i64, scratch_operands = 0 : i64, tpu.core_type = #tpu.core_type<tc>, window_params = [{transform_indices = @transform_0, window_bounds = array<i64: 16, 32>}, {pipeline_mode = #tpu.pipeline_mode<synchronous>, transform_indices = @transform_1, window_bounds = array<i64: 32, 128>}, {pipeline_mode = #tpu.pipeline_mode<synchronous>, transform_indices = @transform_2, window_bounds = array<i64: 1, 128>}, {transform_indices = @transform_3, window_bounds = array<i64: 16, 128>}]} {
    %c0 = arith.constant 0 : index
    %c0_0 = arith.constant 0 : index
    %0 = vector.load %arg1[%c0, %c0_0] : memref<16x32xf32, #tpu.memory_space<vmem>>, vector<16x32xf32>
    %c0_1 = arith.constant 0 : index
    %c0_2 = arith.constant 0 : index
    %1 = vector.load %arg2[%c0_1, %c0_2] : memref<32x128xf32, #tpu.memory_space<vmem>>, vector<32x128xf32>
    %cst = arith.constant dense<0.000000e+00> : vector<16x128xf32>
    %2 = tpu.matmul %0, %1, %cst {dimension_numbers = #tpu.dot_dimension_numbers<[1], [0], [0], [1], [0, 0, 1, 1], [], []>} : vector<16x32xf32>, vector<32x128xf32>, vector<16x128xf32> -> vector<16x128xf32>
    %c0_3 = arith.constant 0 : index
    %c0_4 = arith.constant 0 : index
    %3 = vector.load %arg3[%c0_3, %c0_4] : memref<1x128xf32, #tpu.memory_space<vmem>>, vector<1x128xf32>
    %4 = vector.broadcast %3 : vector<1x128xf32> to vector<16x128xf32>
    %5 = arith.addf %2, %4 : vector<16x128xf32>
    %c0_5 = arith.constant 0 : index
    %c0_6 = arith.constant 0 : index
    %6 = vector.load %arg4[%c0_5, %c0_6] : memref<16x128xf32, #tpu.memory_space<vmem>>, vector<16x128xf32>
    tpu.vector_store %arg4[%c0_5, %c0_6], %5 {strides = array<i32>} : memref<16x128xf32, #tpu.memory_space<vmem>>, vector<16x128xf32>,
    return
  }
  func.func @transform_0(%arg0: i32) -> (i32, i32) {
    %c0_i32 = arith.constant 0 : i32
    %c0_i32_0 = arith.constant 0 : i32
    return %arg0, %c0_i32 : i32, i32
  }
  func.func @transform_1(%arg0: i32) -> (i32, i32) {
    %c0_i32 = arith.constant 0 : i32
    %c0_i32_0 = arith.constant 0 : i32
    %c0_i32_1 = arith.constant 0 : i32
    return %c0_i32, %c0_i32_0 : i32, i32
  }
  func.func @transform_2(%arg0: i32) -> (i32, i32) {
    %c0_i32 = arith.constant 0 : i32
    %c0_i32_0 = arith.constant 0 : i32
    %c0_i32_1 = arith.constant 0 : i32
    return %c0_i32, %c0_i32_0 : i32, i32
  }
  func.func @transform_3(%arg0: i32) -> (i32, i32) {
    %c0_i32 = arith.constant 0 : i32
    %c0_i32_0 = arith.constant 0 : i32
    return %arg0, %c0_i32 : i32, i32
  }
}

module attributes {stable_mosaic.version = 11 : i64} {
  func.func @_lstm_recurrent_kernel(%arg0: i32, %arg1: i32, %arg2: memref<4x2x128xf32, #tpu.memory_space<vmem>>, %arg3: memref<32x128xf32, #tpu.memory_space<vmem>>, %arg4: memref<4x2x32xf32, #tpu.memory_space<vmem>>, %arg5: memref<2x32xf32, #tpu.memory_space<vmem>>, %arg6: memref<2x32xf32, #tpu.memory_space<vmem>>) attributes {dimension_semantics = [#tpu.dimension_semantics<parallel>, #tpu.dimension_semantics<arbitrary>], iteration_bounds = array<i64: 1, 2>, scalar_prefetch = 0 : i64, scratch_operands = 2 : i64, tpu.core_type = #tpu.core_type<tc>, window_params = [{transform_indices = @transform_0, window_bounds = array<i64: 4, 2, 128>}, {pipeline_mode = #tpu.pipeline_mode<synchronous>, transform_indices = @transform_1, window_bounds = array<i64: 32, 128>}, {transform_indices = @transform_2, window_bounds = array<i64: 4, 2, 32>}]} {
    %c0_i32 = arith.constant 0 : i32
    %0 = arith.cmpi eq, %arg1, %c0_i32 : i32
    %1 = arith.extui %0 : i1 to i32
    %c0_i32_0 = arith.constant 0 : i32
    %2 = arith.cmpi ne, %1, %c0_i32_0 : i32
    scf.if %2 {
      %cst_66 = arith.constant 0.000000e+00 : f32
      %168 = vector.broadcast %cst_66 : f32 to vector<2x32xf32>
      %c0_67 = arith.constant 0 : index
      %c0_68 = arith.constant 0 : index
      %169 = vector.load %arg5[%c0_67, %c0_68] : memref<2x32xf32, #tpu.memory_space<vmem>>, vector<2x32xf32>
      tpu.vector_store %arg5[%c0_67, %c0_68], %168 {strides = array<i32>} : memref<2x32xf32, #tpu.memory_space<vmem>>, vector<2x32xf32>,
      %cst_69 = arith.constant 0.000000e+00 : f32
      %170 = vector.broadcast %cst_69 : f32 to vector<2x32xf32>
      %c0_70 = arith.constant 0 : index
      %c0_71 = arith.constant 0 : index
      %171 = vector.load %arg6[%c0_70, %c0_71] : memref<2x32xf32, #tpu.memory_space<vmem>>, vector<2x32xf32>
      tpu.vector_store %arg6[%c0_70, %c0_71], %170 {strides = array<i32>} : memref<2x32xf32, #tpu.memory_space<vmem>>, vector<2x32xf32>,
    } else {
    }
    %c0 = arith.constant 0 : index
    %c0_1 = arith.constant 0 : index
    %3 = vector.load %arg3[%c0, %c0_1] : memref<32x128xf32, #tpu.memory_space<vmem>>, vector<32x128xf32>
    %c0_2 = arith.constant 0 : index
    %c0_3 = arith.constant 0 : index
    %4 = vector.load %arg5[%c0_2, %c0_3] : memref<2x32xf32, #tpu.memory_space<vmem>>, vector<2x32xf32>
    %c0_4 = arith.constant 0 : index
    %c0_5 = arith.constant 0 : index
    %5 = vector.load %arg6[%c0_4, %c0_5] : memref<2x32xf32, #tpu.memory_space<vmem>>, vector<2x32xf32>
    %c0_i32_6 = arith.constant 0 : i32
    %6 = arith.index_cast %c0_i32_6 : i32 to index
    %c0_7 = arith.constant 0 : index
    %c0_8 = arith.constant 0 : index
    %7 = vector.load %arg2[%6, %c0_7, %c0_8] : memref<4x2x128xf32, #tpu.memory_space<vmem>>, vector<1x2x128xf32>
    %8 = vector.shape_cast %7 : vector<1x2x128xf32> to vector<2x128xf32>
    %cst = arith.constant dense<0.000000e+00> : vector<2x128xf32>
    %9 = tpu.matmul %4, %3, %cst {dimension_numbers = #tpu.dot_dimension_numbers<[1], [0], [0], [1], [0, 0, 1, 1], [], []>} : vector<2x32xf32>, vector<32x128xf32>, vector<2x128xf32> -> vector<2x128xf32>
    %10 = arith.addf %8, %9 : vector<2x128xf32>
    %11 = vector.extract_strided_slice %10 {offsets = [0, 0], sizes = [2, 32], strides = [1, 1]} : vector<2x128xf32> to vector<2x32xf32>
    %cst_9 = arith.constant 5.000000e-01 : f32
    %12 = vector.broadcast %cst_9 : f32 to vector<2x32xf32>
    %13 = arith.mulf %12, %11 : vector<2x32xf32>
    %14 = math.tanh %13 : vector<2x32xf32>
    %cst_10 = arith.constant 1.000000e+00 : f32
    %15 = vector.broadcast %cst_10 : f32 to vector<2x32xf32>
    %16 = arith.addf %14, %15 : vector<2x32xf32>
    %cst_11 = arith.constant 5.000000e-01 : f32
    %17 = vector.broadcast %cst_11 : f32 to vector<2x32xf32>
    %18 = arith.mulf %17, %16 : vector<2x32xf32>
    %19 = vector.extract_strided_slice %10 {offsets = [0, 32], sizes = [2, 32], strides = [1, 1]} : vector<2x128xf32> to vector<2x32xf32>
    %cst_12 = arith.constant 5.000000e-01 : f32
    %20 = vector.broadcast %cst_12 : f32 to vector<2x32xf32>
    %21 = arith.mulf %20, %19 : vector<2x32xf32>
    %22 = math.tanh %21 : vector<2x32xf32>
    %cst_13 = arith.constant 1.000000e+00 : f32
    %23 = vector.broadcast %cst_13 : f32 to vector<2x32xf32>
    %24 = arith.addf %22, %23 : vector<2x32xf32>
    %cst_14 = arith.constant 5.000000e-01 : f32
    %25 = vector.broadcast %cst_14 : f32 to vector<2x32xf32>
    %26 = arith.mulf %25, %24 : vector<2x32xf32>
    %27 = vector.extract_strided_slice %10 {offsets = [0, 64], sizes = [2, 32], strides = [1, 1]} : vector<2x128xf32> to vector<2x32xf32>
    %28 = math.tanh %27 : vector<2x32xf32>
    %29 = vector.extract_strided_slice %10 {offsets = [0, 96], sizes = [2, 32], strides = [1, 1]} : vector<2x128xf32> to vector<2x32xf32>
    %cst_15 = arith.constant 5.000000e-01 : f32
    %30 = vector.broadcast %cst_15 : f32 to vector<2x32xf32>
    %31 = arith.mulf %30, %29 : vector<2x32xf32>
    %32 = math.tanh %31 : vector<2x32xf32>
    %cst_16 = arith.constant 1.000000e+00 : f32
    %33 = vector.broadcast %cst_16 : f32 to vector<2x32xf32>
    %34 = arith.addf %32, %33 : vector<2x32xf32>
    %cst_17 = arith.constant 5.000000e-01 : f32
    %35 = vector.broadcast %cst_17 : f32 to vector<2x32xf32>
    %36 = arith.mulf %35, %34 : vector<2x32xf32>
    %37 = arith.mulf %26, %5 : vector<2x32xf32>
    %38 = arith.mulf %18, %28 : vector<2x32xf32>
    %39 = arith.addf %37, %38 : vector<2x32xf32>
    %40 = math.tanh %39 : vector<2x32xf32>
    %41 = arith.mulf %36, %40 : vector<2x32xf32>
    %42 = arith.index_cast %c0_i32_6 : i32 to index
    %c0_18 = arith.constant 0 : index
    %c0_19 = arith.constant 0 : index
    %43 = vector.load %arg4[%42, %c0_18, %c0_19] : memref<4x2x32xf32, #tpu.memory_space<vmem>>, vector<1x2x32xf32>
    %44 = vector.shape_cast %43 : vector<1x2x32xf32> to vector<2x32xf32>
    %45 = vector.shape_cast %41 : vector<2x32xf32> to vector<1x2x32xf32>
    tpu.vector_store %arg4[%42, %c0_18, %c0_19], %45 {strides = array<i32>} : memref<4x2x32xf32, #tpu.memory_space<vmem>>, vector<1x2x32xf32>,
    %c1_i32 = arith.constant 1 : i32
    %46 = arith.index_cast %c1_i32 : i32 to index
    %c0_20 = arith.constant 0 : index
    %c0_21 = arith.constant 0 : index
    %47 = vector.load %arg2[%46, %c0_20, %c0_21] : memref<4x2x128xf32, #tpu.memory_space<vmem>>, vector<1x2x128xf32>
    %48 = vector.shape_cast %47 : vector<1x2x128xf32> to vector<2x128xf32>
    %cst_22 = arith.constant dense<0.000000e+00> : vector<2x128xf32>
    %49 = tpu.matmul %41, %3, %cst_22 {dimension_numbers = #tpu.dot_dimension_numbers<[1], [0], [0], [1], [0, 0, 1, 1], [], []>} : vector<2x32xf32>, vector<32x128xf32>, vector<2x128xf32> -> vector<2x128xf32>
    %50 = arith.addf %48, %49 : vector<2x128xf32>
    %51 = vector.extract_strided_slice %50 {offsets = [0, 0], sizes = [2, 32], strides = [1, 1]} : vector<2x128xf32> to vector<2x32xf32>
    %cst_23 = arith.constant 5.000000e-01 : f32
    %52 = vector.broadcast %cst_23 : f32 to vector<2x32xf32>
    %53 = arith.mulf %52, %51 : vector<2x32xf32>
    %54 = math.tanh %53 : vector<2x32xf32>
    %cst_24 = arith.constant 1.000000e+00 : f32
    %55 = vector.broadcast %cst_24 : f32 to vector<2x32xf32>
    %56 = arith.addf %54, %55 : vector<2x32xf32>
    %cst_25 = arith.constant 5.000000e-01 : f32
    %57 = vector.broadcast %cst_25 : f32 to vector<2x32xf32>
    %58 = arith.mulf %57, %56 : vector<2x32xf32>
    %59 = vector.extract_strided_slice %50 {offsets = [0, 32], sizes = [2, 32], strides = [1, 1]} : vector<2x128xf32> to vector<2x32xf32>
    %cst_26 = arith.constant 5.000000e-01 : f32
    %60 = vector.broadcast %cst_26 : f32 to vector<2x32xf32>
    %61 = arith.mulf %60, %59 : vector<2x32xf32>
    %62 = math.tanh %61 : vector<2x32xf32>
    %cst_27 = arith.constant 1.000000e+00 : f32
    %63 = vector.broadcast %cst_27 : f32 to vector<2x32xf32>
    %64 = arith.addf %62, %63 : vector<2x32xf32>
    %cst_28 = arith.constant 5.000000e-01 : f32
    %65 = vector.broadcast %cst_28 : f32 to vector<2x32xf32>
    %66 = arith.mulf %65, %64 : vector<2x32xf32>
    %67 = vector.extract_strided_slice %50 {offsets = [0, 64], sizes = [2, 32], strides = [1, 1]} : vector<2x128xf32> to vector<2x32xf32>
    %68 = math.tanh %67 : vector<2x32xf32>
    %69 = vector.extract_strided_slice %50 {offsets = [0, 96], sizes = [2, 32], strides = [1, 1]} : vector<2x128xf32> to vector<2x32xf32>
    %cst_29 = arith.constant 5.000000e-01 : f32
    %70 = vector.broadcast %cst_29 : f32 to vector<2x32xf32>
    %71 = arith.mulf %70, %69 : vector<2x32xf32>
    %72 = math.tanh %71 : vector<2x32xf32>
    %cst_30 = arith.constant 1.000000e+00 : f32
    %73 = vector.broadcast %cst_30 : f32 to vector<2x32xf32>
    %74 = arith.addf %72, %73 : vector<2x32xf32>
    %cst_31 = arith.constant 5.000000e-01 : f32
    %75 = vector.broadcast %cst_31 : f32 to vector<2x32xf32>
    %76 = arith.mulf %75, %74 : vector<2x32xf32>
    %77 = arith.mulf %66, %39 : vector<2x32xf32>
    %78 = arith.mulf %58, %68 : vector<2x32xf32>
    %79 = arith.addf %77, %78 : vector<2x32xf32>
    %80 = math.tanh %79 : vector<2x32xf32>
    %81 = arith.mulf %76, %80 : vector<2x32xf32>
    %82 = arith.index_cast %c1_i32 : i32 to index
    %c0_32 = arith.constant 0 : index
    %c0_33 = arith.constant 0 : index
    %83 = vector.load %arg4[%82, %c0_32, %c0_33] : memref<4x2x32xf32, #tpu.memory_space<vmem>>, vector<1x2x32xf32>
    %84 = vector.shape_cast %83 : vector<1x2x32xf32> to vector<2x32xf32>
    %85 = vector.shape_cast %81 : vector<2x32xf32> to vector<1x2x32xf32>
    tpu.vector_store %arg4[%82, %c0_32, %c0_33], %85 {strides = array<i32>} : memref<4x2x32xf32, #tpu.memory_space<vmem>>, vector<1x2x32xf32>,
    %c2_i32 = arith.constant 2 : i32
    %86 = arith.index_cast %c2_i32 : i32 to index
    %c0_34 = arith.constant 0 : index
    %c0_35 = arith.constant 0 : index
    %87 = vector.load %arg2[%86, %c0_34, %c0_35] : memref<4x2x128xf32, #tpu.memory_space<vmem>>, vector<1x2x128xf32>
    %88 = vector.shape_cast %87 : vector<1x2x128xf32> to vector<2x128xf32>
    %cst_36 = arith.constant dense<0.000000e+00> : vector<2x128xf32>
    %89 = tpu.matmul %81, %3, %cst_36 {dimension_numbers = #tpu.dot_dimension_numbers<[1], [0], [0], [1], [0, 0, 1, 1], [], []>} : vector<2x32xf32>, vector<32x128xf32>, vector<2x128xf32> -> vector<2x128xf32>
    %90 = arith.addf %88, %89 : vector<2x128xf32>
    %91 = vector.extract_strided_slice %90 {offsets = [0, 0], sizes = [2, 32], strides = [1, 1]} : vector<2x128xf32> to vector<2x32xf32>
    %cst_37 = arith.constant 5.000000e-01 : f32
    %92 = vector.broadcast %cst_37 : f32 to vector<2x32xf32>
    %93 = arith.mulf %92, %91 : vector<2x32xf32>
    %94 = math.tanh %93 : vector<2x32xf32>
    %cst_38 = arith.constant 1.000000e+00 : f32
    %95 = vector.broadcast %cst_38 : f32 to vector<2x32xf32>
    %96 = arith.addf %94, %95 : vector<2x32xf32>
    %cst_39 = arith.constant 5.000000e-01 : f32
    %97 = vector.broadcast %cst_39 : f32 to vector<2x32xf32>
    %98 = arith.mulf %97, %96 : vector<2x32xf32>
    %99 = vector.extract_strided_slice %90 {offsets = [0, 32], sizes = [2, 32], strides = [1, 1]} : vector<2x128xf32> to vector<2x32xf32>
    %cst_40 = arith.constant 5.000000e-01 : f32
    %100 = vector.broadcast %cst_40 : f32 to vector<2x32xf32>
    %101 = arith.mulf %100, %99 : vector<2x32xf32>
    %102 = math.tanh %101 : vector<2x32xf32>
    %cst_41 = arith.constant 1.000000e+00 : f32
    %103 = vector.broadcast %cst_41 : f32 to vector<2x32xf32>
    %104 = arith.addf %102, %103 : vector<2x32xf32>
    %cst_42 = arith.constant 5.000000e-01 : f32
    %105 = vector.broadcast %cst_42 : f32 to vector<2x32xf32>
    %106 = arith.mulf %105, %104 : vector<2x32xf32>
    %107 = vector.extract_strided_slice %90 {offsets = [0, 64], sizes = [2, 32], strides = [1, 1]} : vector<2x128xf32> to vector<2x32xf32>
    %108 = math.tanh %107 : vector<2x32xf32>
    %109 = vector.extract_strided_slice %90 {offsets = [0, 96], sizes = [2, 32], strides = [1, 1]} : vector<2x128xf32> to vector<2x32xf32>
    %cst_43 = arith.constant 5.000000e-01 : f32
    %110 = vector.broadcast %cst_43 : f32 to vector<2x32xf32>
    %111 = arith.mulf %110, %109 : vector<2x32xf32>
    %112 = math.tanh %111 : vector<2x32xf32>
    %cst_44 = arith.constant 1.000000e+00 : f32
    %113 = vector.broadcast %cst_44 : f32 to vector<2x32xf32>
    %114 = arith.addf %112, %113 : vector<2x32xf32>
    %cst_45 = arith.constant 5.000000e-01 : f32
    %115 = vector.broadcast %cst_45 : f32 to vector<2x32xf32>
    %116 = arith.mulf %115, %114 : vector<2x32xf32>
    %117 = arith.mulf %106, %79 : vector<2x32xf32>
    %118 = arith.mulf %98, %108 : vector<2x32xf32>
    %119 = arith.addf %117, %118 : vector<2x32xf32>
    %120 = math.tanh %119 : vector<2x32xf32>
    %121 = arith.mulf %116, %120 : vector<2x32xf32>
    %122 = arith.index_cast %c2_i32 : i32 to index
    %c0_46 = arith.constant 0 : index
    %c0_47 = arith.constant 0 : index
    %123 = vector.load %arg4[%122, %c0_46, %c0_47] : memref<4x2x32xf32, #tpu.memory_space<vmem>>, vector<1x2x32xf32>
    %124 = vector.shape_cast %123 : vector<1x2x32xf32> to vector<2x32xf32>
    %125 = vector.shape_cast %121 : vector<2x32xf32> to vector<1x2x32xf32>
    tpu.vector_store %arg4[%122, %c0_46, %c0_47], %125 {strides = array<i32>} : memref<4x2x32xf32, #tpu.memory_space<vmem>>, vector<1x2x32xf32>,
    %c3_i32 = arith.constant 3 : i32
    %126 = arith.index_cast %c3_i32 : i32 to index
    %c0_48 = arith.constant 0 : index
    %c0_49 = arith.constant 0 : index
    %127 = vector.load %arg2[%126, %c0_48, %c0_49] : memref<4x2x128xf32, #tpu.memory_space<vmem>>, vector<1x2x128xf32>
    %128 = vector.shape_cast %127 : vector<1x2x128xf32> to vector<2x128xf32>
    %cst_50 = arith.constant dense<0.000000e+00> : vector<2x128xf32>
    %129 = tpu.matmul %121, %3, %cst_50 {dimension_numbers = #tpu.dot_dimension_numbers<[1], [0], [0], [1], [0, 0, 1, 1], [], []>} : vector<2x32xf32>, vector<32x128xf32>, vector<2x128xf32> -> vector<2x128xf32>
    %130 = arith.addf %128, %129 : vector<2x128xf32>
    %131 = vector.extract_strided_slice %130 {offsets = [0, 0], sizes = [2, 32], strides = [1, 1]} : vector<2x128xf32> to vector<2x32xf32>
    %cst_51 = arith.constant 5.000000e-01 : f32
    %132 = vector.broadcast %cst_51 : f32 to vector<2x32xf32>
    %133 = arith.mulf %132, %131 : vector<2x32xf32>
    %134 = math.tanh %133 : vector<2x32xf32>
    %cst_52 = arith.constant 1.000000e+00 : f32
    %135 = vector.broadcast %cst_52 : f32 to vector<2x32xf32>
    %136 = arith.addf %134, %135 : vector<2x32xf32>
    %cst_53 = arith.constant 5.000000e-01 : f32
    %137 = vector.broadcast %cst_53 : f32 to vector<2x32xf32>
    %138 = arith.mulf %137, %136 : vector<2x32xf32>
    %139 = vector.extract_strided_slice %130 {offsets = [0, 32], sizes = [2, 32], strides = [1, 1]} : vector<2x128xf32> to vector<2x32xf32>
    %cst_54 = arith.constant 5.000000e-01 : f32
    %140 = vector.broadcast %cst_54 : f32 to vector<2x32xf32>
    %141 = arith.mulf %140, %139 : vector<2x32xf32>
    %142 = math.tanh %141 : vector<2x32xf32>
    %cst_55 = arith.constant 1.000000e+00 : f32
    %143 = vector.broadcast %cst_55 : f32 to vector<2x32xf32>
    %144 = arith.addf %142, %143 : vector<2x32xf32>
    %cst_56 = arith.constant 5.000000e-01 : f32
    %145 = vector.broadcast %cst_56 : f32 to vector<2x32xf32>
    %146 = arith.mulf %145, %144 : vector<2x32xf32>
    %147 = vector.extract_strided_slice %130 {offsets = [0, 64], sizes = [2, 32], strides = [1, 1]} : vector<2x128xf32> to vector<2x32xf32>
    %148 = math.tanh %147 : vector<2x32xf32>
    %149 = vector.extract_strided_slice %130 {offsets = [0, 96], sizes = [2, 32], strides = [1, 1]} : vector<2x128xf32> to vector<2x32xf32>
    %cst_57 = arith.constant 5.000000e-01 : f32
    %150 = vector.broadcast %cst_57 : f32 to vector<2x32xf32>
    %151 = arith.mulf %150, %149 : vector<2x32xf32>
    %152 = math.tanh %151 : vector<2x32xf32>
    %cst_58 = arith.constant 1.000000e+00 : f32
    %153 = vector.broadcast %cst_58 : f32 to vector<2x32xf32>
    %154 = arith.addf %152, %153 : vector<2x32xf32>
    %cst_59 = arith.constant 5.000000e-01 : f32
    %155 = vector.broadcast %cst_59 : f32 to vector<2x32xf32>
    %156 = arith.mulf %155, %154 : vector<2x32xf32>
    %157 = arith.mulf %146, %119 : vector<2x32xf32>
    %158 = arith.mulf %138, %148 : vector<2x32xf32>
    %159 = arith.addf %157, %158 : vector<2x32xf32>
    %160 = math.tanh %159 : vector<2x32xf32>
    %161 = arith.mulf %156, %160 : vector<2x32xf32>
    %162 = arith.index_cast %c3_i32 : i32 to index
    %c0_60 = arith.constant 0 : index
    %c0_61 = arith.constant 0 : index
    %163 = vector.load %arg4[%162, %c0_60, %c0_61] : memref<4x2x32xf32, #tpu.memory_space<vmem>>, vector<1x2x32xf32>
    %164 = vector.shape_cast %163 : vector<1x2x32xf32> to vector<2x32xf32>
    %165 = vector.shape_cast %161 : vector<2x32xf32> to vector<1x2x32xf32>
    tpu.vector_store %arg4[%162, %c0_60, %c0_61], %165 {strides = array<i32>} : memref<4x2x32xf32, #tpu.memory_space<vmem>>, vector<1x2x32xf32>,
    %c4_i32 = arith.constant 4 : i32
    %c0_62 = arith.constant 0 : index
    %c0_63 = arith.constant 0 : index
    %166 = vector.load %arg5[%c0_62, %c0_63] : memref<2x32xf32, #tpu.memory_space<vmem>>, vector<2x32xf32>
    tpu.vector_store %arg5[%c0_62, %c0_63], %161 {strides = array<i32>} : memref<2x32xf32, #tpu.memory_space<vmem>>, vector<2x32xf32>,
    %c0_64 = arith.constant 0 : index
    %c0_65 = arith.constant 0 : index
    %167 = vector.load %arg6[%c0_64, %c0_65] : memref<2x32xf32, #tpu.memory_space<vmem>>, vector<2x32xf32>
    tpu.vector_store %arg6[%c0_64, %c0_65], %159 {strides = array<i32>} : memref<2x32xf32, #tpu.memory_space<vmem>>, vector<2x32xf32>,
    return
  }
  func.func @transform_0(%arg0: i32, %arg1: i32) -> (i32, i32, i32) {
    %c0_i32 = arith.constant 0 : i32
    %c0_i32_0 = arith.constant 0 : i32
    return %arg1, %arg0, %c0_i32 : i32, i32, i32
  }
  func.func @transform_1(%arg0: i32, %arg1: i32) -> (i32, i32) {
    %c0_i32 = arith.constant 0 : i32
    %c0_i32_0 = arith.constant 0 : i32
    %c0_i32_1 = arith.constant 0 : i32
    return %c0_i32, %c0_i32_0 : i32, i32
  }
  func.func @transform_2(%arg0: i32, %arg1: i32) -> (i32, i32, i32) {
    %c0_i32 = arith.constant 0 : i32
    %c0_i32_0 = arith.constant 0 : i32
    return %arg1, %arg0, %c0_i32 : i32, i32, i32
  }
}

module attributes {stable_mosaic.version = 11 : i64} {
  func.func @_matmul_bias_kernel(%arg0: i32, %arg1: memref<16x32xf32, #tpu.memory_space<vmem>>, %arg2: memref<32x8xf32, #tpu.memory_space<vmem>>, %arg3: memref<1x8xf32, #tpu.memory_space<vmem>>, %arg4: memref<16x8xf32, #tpu.memory_space<vmem>>) attributes {dimension_semantics = [#tpu.dimension_semantics<parallel>], iteration_bounds = array<i64: 1>, scalar_prefetch = 0 : i64, scratch_operands = 0 : i64, tpu.core_type = #tpu.core_type<tc>, window_params = [{transform_indices = @transform_0, window_bounds = array<i64: 16, 32>}, {pipeline_mode = #tpu.pipeline_mode<synchronous>, transform_indices = @transform_1, window_bounds = array<i64: 32, 8>}, {pipeline_mode = #tpu.pipeline_mode<synchronous>, transform_indices = @transform_2, window_bounds = array<i64: 1, 8>}, {transform_indices = @transform_3, window_bounds = array<i64: 16, 8>}]} {
    %c0 = arith.constant 0 : index
    %c0_0 = arith.constant 0 : index
    %0 = vector.load %arg1[%c0, %c0_0] : memref<16x32xf32, #tpu.memory_space<vmem>>, vector<16x32xf32>
    %c0_1 = arith.constant 0 : index
    %c0_2 = arith.constant 0 : index
    %1 = vector.load %arg2[%c0_1, %c0_2] : memref<32x8xf32, #tpu.memory_space<vmem>>, vector<32x8xf32>
    %cst = arith.constant dense<0.000000e+00> : vector<16x8xf32>
    %2 = tpu.matmul %0, %1, %cst {dimension_numbers = #tpu.dot_dimension_numbers<[1], [0], [0], [1], [0, 0, 1, 1], [], []>} : vector<16x32xf32>, vector<32x8xf32>, vector<16x8xf32> -> vector<16x8xf32>
    %c0_3 = arith.constant 0 : index
    %c0_4 = arith.constant 0 : index
    %3 = vector.load %arg3[%c0_3, %c0_4] : memref<1x8xf32, #tpu.memory_space<vmem>>, vector<1x8xf32>
    %4 = vector.broadcast %3 : vector<1x8xf32> to vector<16x8xf32>
    %5 = arith.addf %2, %4 : vector<16x8xf32>
    %c0_5 = arith.constant 0 : index
    %c0_6 = arith.constant 0 : index
    %6 = vector.load %arg4[%c0_5, %c0_6] : memref<16x8xf32, #tpu.memory_space<vmem>>, vector<16x8xf32>
    tpu.vector_store %arg4[%c0_5, %c0_6], %5 {strides = array<i32>} : memref<16x8xf32, #tpu.memory_space<vmem>>, vector<16x8xf32>,
    return
  }
  func.func @transform_0(%arg0: i32) -> (i32, i32) {
    %c0_i32 = arith.constant 0 : i32
    %c0_i32_0 = arith.constant 0 : i32
    return %arg0, %c0_i32 : i32, i32
  }
  func.func @transform_1(%arg0: i32) -> (i32, i32) {
    %c0_i32 = arith.constant 0 : i32
    %c0_i32_0 = arith.constant 0 : i32
    %c0_i32_1 = arith.constant 0 : i32
    return %c0_i32, %c0_i32_0 : i32, i32
  }
  func.func @transform_2(%arg0: i32) -> (i32, i32) {
    %c0_i32 = arith.constant 0 : i32
    %c0_i32_0 = arith.constant 0 : i32
    %c0_i32_1 = arith.constant 0 : i32
    return %c0_i32, %c0_i32_0 : i32, i32
  }
  func.func @transform_3(%arg0: i32) -> (i32, i32) {
    %c0_i32 = arith.constant 0 : i32
    %c0_i32_0 = arith.constant 0 : i32
    return %arg0, %c0_i32 : i32, i32
  }
}

</mosaic_0001>

<bundles_post_ra>
// kernel: asr_lstm_forward.5
= control target key start
LH: loop header
LB: loop body
LE: loop exit
PB: predicated region body
PF: predicated region fallthrough
CT: control target
= control target key end

     0   :  { %vm25_vm0 = vcmask 130048   ;;  %s168_s1 = inlined_call_operand.vmem [shape: f32[16,128], index: 1, kind: input, shape index: {}]   ;;  %s169_s0 = inlined_call_operand.vmem [shape: f32[16,16], index: 0, kind: input, shape index: {}]   ;;  %s170_s2 = inlined_call_operand.vmem [shape: f32[1,128], index: 2, kind: input, shape index: {}]   ;;  %s171_s3 = inlined_call_operand.vmem [shape: f32[16,128], index: 3, kind: output, shape index: {}]  }
   0x1   :  { %v17_v0 = vld [vmem:[%s168_s1 + $0x8] sm:$0xff]  ;;  %v16_v1 = vld [vmem:[%s168_s1] sm:$0xff] }
   0x2   :  { %v14_v2 = vld [vmem:[%s169_s0] sm:$0xff]  ;;  %120 = vmatprep.subr.mxu0 %v17_v0  ;;  %v15_v3 = vld [vmem:[%s169_s0 + $0x8] sm:$0xff] }
   0x3   :  { %124 = vmatprep.mubr.msk.f32.mxu0 %vm25_vm0, %v14_v2  ;;  %121 = vmatpush3.msra.mxu0 %v17_v0  ;;  %v113_v4 = vld [vmem:[%s170_s2] ss:$0 sm:$0xff] }
   0x4   :  { %122 = vmatprep.subr.mxu0 %v16_v1 }
   0x5   :  { %123 = vmatpush3.msra.mxu0 %v16_v1 }
   0x6   :  { %125 = vmatmul.mubr.msk.f32.vlgmr.msra.gmra.mxu0 %vm25_vm0, %v15_v3 }
  0xc6   :  { %v126_v5 = vpop.f32.mrf.mxu0 }
  0xc7   :  { %v104_v6 = vadd.f32 %v126_v5, %v113_v4 }
  0xc8   :  { %v98_v7 = vpop.f32.mrf.mxu0 }
  0xc9   :  { %108 = vst [vmem:[%s171_s3 + $0x8] sm:$0xff] %v104_v6  ;;  %v99_v8 = vadd.f32 %v113_v4, %v98_v7 }
  0xcb   :  { %107 = vst [vmem:[%s171_s3] sm:$0xff] %v99_v8 }

// kernel: asr_lstm_forward.7
= control target key start
LH: loop header
LB: loop body
LE: loop exit
PB: predicated region body
PF: predicated region fallthrough
CT: control target
= control target key end

     0   :  { %vm27_vm0 = vcmask 261120   ;;  %s184_s1 = inlined_call_operand.vmem [shape: f32[32,128], index: 1, kind: input, shape index: {}]   ;;  %s185_s0 = inlined_call_operand.vmem [shape: f32[16,32], index: 0, kind: input, shape index: {}]   ;;  %s186_s2 = inlined_call_operand.vmem [shape: f32[1,128], index: 2, kind: input, shape index: {}]   ;;  %s187_s3 = inlined_call_operand.vmem [shape: f32[16,128], index: 3, kind: output, shape index: {}]  }
   0x1   :  { %v19_v0 = vld [vmem:[%s184_s1 + $0x18] sm:$0xff]  ;;  %v18_v1 = vld [vmem:[%s184_s1 + $0x10] sm:$0xff]  ;;  %v14_v2 = vld [vmem:[%s185_s0] sm:$0xff] }
   0x2   :  { %124 = vmatprep.subr.mxu0 %v19_v0  ;;  %v17_v3 = vld [vmem:[%s184_s1 + $0x8] sm:$0xff]  ;;  %132 = vmatprep.mubr.msk.f32.mxu0 %vm27_vm0, %v14_v2  ;;  %v16_v4 = vld [vmem:[%s184_s1] sm:$0xff] }
   0x3   :  { %125 = vmatpush3.msra.mxu0 %v19_v0  ;;  %v15_v5 = vld [vmem:[%s185_s0 + $0x8] sm:$0xff]  ;;  %v115_v6 = vld [vmem:[%s186_s2] ss:$0 sm:$0xff] }
   0x4   :  { %126 = vmatprep.subr.mxu0 %v18_v1 }
   0x5   :  { %127 = vmatpush3.msra.mxu0 %v18_v1 }
   0x6   :  { %128 = vmatprep.subr.mxu0 %v17_v3 }
   0x7   :  { %129 = vmatpush3.msra.mxu0 %v17_v3 }
   0x8   :  { %130 = vmatprep.subr.mxu0 %v16_v4 }
   0x9   :  { %131 = vmatpush3.msra.mxu0 %v16_v4 }
   0xa   :  { %133 = vmatmul.mubr.msk.f32.vlgmr.msra.gmra.mxu0 %vm27_vm0, %v15_v5 }
  0xca   :  { %v134_v7 = vpop.f32.mrf.mxu0 }
  0xcb   :  { %v106_v8 = vadd.f32 %v134_v7, %v115_v6 }
  0xcc   :  { %v100_v9 = vpop.f32.mrf.mxu0 }
  0xcd   :  { %110 = vst [vmem:[%s187_s3 + $0x8] sm:$0xff] %v106_v8  ;;  %v101_v10 = vadd.f32 %v115_v6, %v100_v9 }
  0xcf   :  { %109 = vst [vmem:[%s187_s3] sm:$0xff] %v101_v10 }

// kernel: asr_lstm_forward.6
= control target key start
LH: loop header
LB: loop body
LE: loop exit
PB: predicated region body
PF: predicated region fallthrough
CT: control target
= control target key end

     0   :  { %s877_s9 = smov 0   ;;  %s879_s10 = smov 0   ;;  %s1003_s0 = inlined_call_operand.vmem [shape: f32[8,2,128], index: 0, kind: input, shape index: {}]   ;;  %s1004_s1 = inlined_call_operand.vmem [shape: f32[32,128], index: 1, kind: input, shape index: {}]   ;;  %s1005_s2 = inlined_call_operand.vmem [shape: f32[8,2,32], index: 2, kind: output, shape index: {}]  }
   0x1   :  { %s881_s11 = smov 0  }
   0x2 LB: > { %s21_s12 = sadd.s32 1, %s850_s10  ;;  %p696_p0 = scmp.ge.s32.totalorder %s854_s11, 1  ;;  %s854_s11 = sphi %s881_s11, %s12_s11   ;;  %s850_s10 = sphi %s879_s10, %s1007_s10   ;;  %s846_s9 = sphi %s877_s9, %s1006_s9  }
   0x3   : > { %p22_p1 = scmp.ge.s32.totalorder %s21_s12, 2  ;;  %p132_p2 = scmp.lt.s32.totalorder %s854_s11, 3 }
   0x5   : > { %s1009_s12 = smov (%p22_p1, %s21_s12), 0  ;;  %p133_p3 = pnand %p696_p0, %p132_p2 }
   0x6   : > { %s697_s13 = sshll.u32 (!%p133_p3), %s846_s9, 2  ;;  %p701_p5 = scmp.ne.s32.totalorder (!%p133_p3), %s846_s9, 0 }
   0x7   : > { %136 = sbr.rel (%p133_p3) target bundleno = 2785 (0xae1), region = 28  ;;  %p161_p4 = scmp.lt.s32.totalorder (!%p133_p3), %s697_s13, 7 }
   0xc   : > { %s1011_s13 = smov (!%p161_p4, %s697_s13), 7  ;;  %181 = sbr.rel (%p701_p5) target bundleno = 19 (0x13), region = 32 }
   0xd   : > { %s698_s14 = sshll.u32 %s1011_s13, 1 }
   0xe   : > { %s898_s17 = scalar_lea.vmem %s1003_s0, %s698_s14  ;;  %s903_s20 = scalar_lea.vmem %s1005_s2, %s698_s14 }
  0x11   : > { %vm182_vm0 = vcmask 254976   ;;  %v856_v0 = vmov 0.0  }
  0x12   : > { %183 = vst.msk [vmem:[#allocation2] sm:$0x3] %vm182_vm0, %v856_v0  ;;  %184 = vst.msk [vmem:[#allocation3] sm:$0x3] %vm182_vm0, %v856_v0 }
  0x13 PF: > { %v908_v1 = vld [vmem:[%s1004_s1 + $0x18] sm:$0xff]  ;;  %v857_v2 = vmov 0.0   ;;  %v914_v3 = vld [vmem:[%s1004_s1 + $0x10] sm:$0xff]  ;;  %vm858_vm1 = vmmov 0   ;;  %v924_v4 = vld [vmem:[%s1004_s1 + $0x8] sm:$0xff]  ;;  %vm192_vm2 = vcmask 261120  }
  0x14   : > { %734 = vmatprep.subr.mxu0 %v857_v2  ;;  %742 = vmatprep.mubr.msk.f32.mxu0 %vm858_vm1, %v857_v2  ;;  %v185_v5 = vld [vmem:[%s1004_s1] sm:$0xff]  ;;  %s859_s29 = smov 64   ;;  %s860_s30 = smov 32   ;;  %vm297_vm3 = vcmask 254976  }
  0x15   : > { %735 = vmatpush3.msra.mxu0 %v908_v1  ;;  %745 = vmatprep.subr.mxu1 %v857_v2  ;;  %v191_v7 = vld [vmem:[%s898_s17] sm:$0x3]  ;;  %v703_v27 = vld [vmem:[%s898_s17 + $0x2] sm:$0x3]  ;;  %v706_v45 = vld [vmem:[%s898_s17 + $0x4] sm:$0x3] }
  0x16   : > { %736 = vmatprep.subr.mxu0 %v857_v2  ;;  %746 = vmatpush3.msra.mxu1 %v908_v1  ;;  %v709_v63 = vld [vmem:[%s898_s17 + $0x6] sm:$0x3]  ;;  %s861_s3 = smov 96  }
  0x17   : > { %737 = vmatpush3.msra.mxu0 %v914_v3  ;;  %747 = vmatprep.subr.mxu1 %v857_v2 }
  0x18   : > { %738 = vmatprep.subr.mxu0 %v857_v2  ;;  %748 = vmatpush3.msra.mxu1 %v914_v3 }
  0x19   : > { %739 = vmatpush3.msra.mxu0 %v924_v4  ;;  %v189_v6 = vld [vmem:[#allocation2] sm:$0x3]  ;;  %749 = vmatprep.subr.mxu1 %v857_v2  ;;  %v190_v12 = vld [vmem:[#allocation3] sm:$0x3] }
  0x1a   : > { %740 = vmatprep.subr.mxu0 %v857_v2  ;;  %750 = vmatpush3.msra.mxu1 %v924_v4 }
  0x1b   : > { %741 = vmatpush3.msra.mxu0 %v185_v5  ;;  %751 = vmatprep.subr.mxu1 %v857_v2 }
  0x1c   : > { %743 = vmatmul.mubr.msk.f32.vlgmr.msra.gmra.mxu0 %vm192_vm2, %v189_v6  ;;  %752 = vmatpush3.msra.mxu1 %v185_v5 }
  0x1d   : > { %753 = vmatprep.mubr.msk.f32.mxu1 %vm858_vm1, %v857_v2  ;;  %756 = vmatprep.subr.mxu0 %v857_v2 }
  0x1e   : > { %757 = vmatpush3.msra.mxu0 %v908_v1  ;;  %764 = vmatprep.mubr.msk.f32.mxu0 %vm858_vm1, %v857_v2 }
  0x1f   : > { %758 = vmatprep.subr.mxu0 %v857_v2  ;;  %767 = vmatprep.subr.mxu1 %v857_v2 }
  0x20   : > { %759 = vmatpush3.msra.mxu0 %v914_v3 }
  0x21   : > { %760 = vmatprep.subr.mxu0 %v857_v2 }
  0x22   : > { %761 = vmatpush3.msra.mxu0 %v924_v4 }
  0x23   : > { %762 = vmatprep.subr.mxu0 %v857_v2 }
  0x24   : > { %763 = vmatpush3.msra.mxu0 %v185_v5 }
  0xdc   : > { %v262_v8 = vpop.f32.mrf.mxu0 }
  0xdd   : > { %v266_v9 = vadd.f32 %v262_v8, %v191_v7 }
  0xde   : > { %v744_v10 = vpop.f32.mrf.mxu0 }
  0xdf   : > { %808 = vtanh.f32 %v266_v9  ;;  %v267_v13 = vmul.f32 0.5, %v266_v9 }
  0xe1   : > { %810 = vtanh.f32 %v267_v13 }
  0xec   : > { %v809_v11 = vpop.eup %808 }
  0xed   : > { %278 = vrot.lane.b32.xlu0 %v809_v11, %s859_s29 }
  0xee   : > { %v811_v14 = vpop.eup %810 }
  0xef   : > { %v269_v15 = vadd.f32 1.0, %v811_v14 }
  0xf1   : > { %273 = vrot.lane.b32.xlu0 %v190_v12, %s860_s30  ;;  %v270_v16 = vmul.f32 0.5, %v269_v15 }
 0x15f   : > { %v279_v17 = vpop.permute.xlu0 %278 }
 0x160   : > { %v281_v18 = vmul.f32 %v279_v17, %v270_v16 }
 0x162   : > { %283 = vrot.lane.b32.xlu1 %v281_v18, %s860_s30 }
 0x163   : > { %v274_v19 = vpop.permute.xlu0 %273 }
 0x164   : > { %v276_v20 = vmul.f32 %v274_v19, %v270_v16 }
 0x1d4   : > { %v284_v21 = vpop.permute.xlu1 %283 }
 0x1d5   : > { %v286_v22 = vadd.f32 %v284_v21, %v276_v20 }
 0x1d7   : > { %812 = vtanh.f32 %v286_v22 }
 0x1e4   : > { %v813_v23 = vpop.eup %812 }
 0x1e5   : > { %289 = vrot.lane.b32.xlu1 %v813_v23, %s859_s29 }
 0x257   : > { %v290_v24 = vpop.permute.xlu1 %289 }
 0x258   : > { %v292_v25 = vmul.f32 %v290_v24, %v270_v16 }
 0x25a   : > { %294 = vrot.lane.b32.xlu0 %v292_v25, %s860_s30 }
 0x2cc   : > { %v295_v26 = vpop.permute.xlu0 %294 }
 0x2cd   : > { %298 = vst.msk [vmem:[%s903_s20] sm:$0x3] %vm297_vm3, %v295_v26  ;;  %754 = vmatmul.mubr.msk.f32.vlgmr.msra.gmra.mxu1 %vm192_vm2, %v295_v26 }
 0x2ce   : > { %768 = vmatpush3.msra.mxu1 %v908_v1  ;;  %775 = vmatprep.mubr.msk.f32.mxu1 %vm858_vm1, %v857_v2 }
 0x2cf   : > { %769 = vmatprep.subr.mxu1 %v857_v2 }
 0x2d0   : > { %770 = vmatpush3.msra.mxu1 %v914_v3 }
 0x2d1   : > { %771 = vmatprep.subr.mxu1 %v857_v2 }
 0x2d2   : > { %772 = vmatpush3.msra.mxu1 %v924_v4 }
 0x2d3   : > { %773 = vmatprep.subr.mxu1 %v857_v2 }
 0x2d4   : > { %774 = vmatpush3.msra.mxu1 %v185_v5 }
 0x38d   : > { %v369_v28 = vpop.f32.mrf.mxu1 }
 0x38e   : > { %v373_v29 = vadd.f32 %v703_v27, %v369_v28 }
 0x38f   : > { %v755_v30 = vpop.f32.mrf.mxu1 }
 0x390   : > { %814 = vtanh.f32 %v373_v29  ;;  %v374_v32 = vmul.f32 0.5, %v373_v29 }
 0x392   : > { %816 = vtanh.f32 %v374_v32 }
 0x39d   : > { %v815_v31 = vpop.eup %814 }
 0x39e   : > { %381 = vrot.lane.b32.xlu1 %v815_v31, %s859_s29 }
 0x39f   : > { %v817_v33 = vpop.eup %816 }
 0x3a0   : > { %v376_v34 = vadd.f32 1.0, %v817_v33 }
 0x3a2   : > { %v377_v35 = vmul.f32 0.5, %v376_v34 }
 0x3a4   : > { %v379_v38 = vmul.f32 %v377_v35, %v286_v22 }
 0x410   : > { %v382_v36 = vpop.permute.xlu1 %381 }
 0x411   : > { %v384_v37 = vmul.f32 %v382_v36, %v377_v35 }
 0x413   : > { %386 = vrot.lane.b32.xlu0 %v384_v37, %s860_s30 }
 0x485   : > { %v387_v39 = vpop.permute.xlu0 %386 }
 0x486   : > { %v389_v40 = vadd.f32 %v387_v39, %v379_v38 }
 0x488   : > { %818 = vtanh.f32 %v389_v40 }
 0x495   : > { %v819_v41 = vpop.eup %818 }
 0x496   : > { %392 = vrot.lane.b32.xlu1 %v819_v41, %s859_s29 }
 0x508   : > { %v393_v42 = vpop.permute.xlu1 %392 }
 0x509   : > { %v395_v43 = vmul.f32 %v393_v42, %v377_v35 }
 0x50b   : > { %397 = vrot.lane.b32.xlu0 %v395_v43, %s860_s30 }
 0x57d   : > { %v398_v44 = vpop.permute.xlu0 %397 }
 0x57e   : > { %705 = vst.msk [vmem:[%s903_s20 + $0x2] sm:$0x3] %vm297_vm3, %v398_v44  ;;  %765 = vmatmul.mubr.msk.f32.vlgmr.msra.gmra.mxu0 %vm192_vm2, %v398_v44 }
 0x63e   : > { %v472_v46 = vpop.f32.mrf.mxu0 }
 0x63f   : > { %v476_v47 = vadd.f32 %v706_v45, %v472_v46 }
 0x640   : > { %v766_v48 = vpop.f32.mrf.mxu0 }
 0x641   : > { %820 = vtanh.f32 %v476_v47  ;;  %v477_v50 = vmul.f32 0.5, %v476_v47 }
 0x643   : > { %822 = vtanh.f32 %v477_v50 }
 0x64e   : > { %v821_v49 = vpop.eup %820 }
 0x64f   : > { %484 = vrot.lane.b32.xlu1 %v821_v49, %s859_s29 }
 0x650   : > { %v823_v51 = vpop.eup %822 }
 0x651   : > { %v479_v52 = vadd.f32 1.0, %v823_v51 }
 0x653   : > { %v480_v53 = vmul.f32 0.5, %v479_v52 }
 0x655   : > { %v482_v56 = vmul.f32 %v480_v53, %v389_v40 }
 0x6c1   : > { %v485_v54 = vpop.permute.xlu1 %484 }
 0x6c2   : > { %v487_v55 = vmul.f32 %v485_v54, %v480_v53 }
 0x6c4   : > { %489 = vrot.lane.b32.xlu0 %v487_v55, %s860_s30 }
 0x736   : > { %v490_v57 = vpop.permute.xlu0 %489 }
 0x737   : > { %v492_v58 = vadd.f32 %v490_v57, %v482_v56 }
 0x739   : > { %824 = vtanh.f32 %v492_v58 }
 0x746   : > { %v825_v59 = vpop.eup %824 }
 0x747   : > { %495 = vrot.lane.b32.xlu1 %v825_v59, %s859_s29 }
 0x7b9   : > { %v496_v60 = vpop.permute.xlu1 %495 }
 0x7ba   : > { %v498_v61 = vmul.f32 %v496_v60, %v480_v53 }
 0x7bc   : > { %500 = vrot.lane.b32.xlu0 %v498_v61, %s860_s30 }
 0x82e   : > { %v501_v62 = vpop.permute.xlu0 %500 }
 0x82f   : > { %708 = vst.msk [vmem:[%s903_s20 + $0x4] sm:$0x3] %vm297_vm3, %v501_v62  ;;  %776 = vmatmul.mubr.msk.f32.vlgmr.msra.gmra.mxu1 %vm192_vm2, %v501_v62 }
 0x8ef   : > { %v575_v0 = vpop.f32.mrf.mxu1 }
 0x8f0   : > { %v579_v1 = vadd.f32 %v709_v63, %v575_v0 }
 0x8f1   : > { %v777_v2 = vpop.f32.mrf.mxu1 }
 0x8f2   : > { %826 = vtanh.f32 %v579_v1  ;;  %v580_v4 = vmul.f32 0.5, %v579_v1 }
 0x8f4   : > { %828 = vtanh.f32 %v580_v4 }
 0x8ff   : > { %v827_v3 = vpop.eup %826 }
 0x900   : > { %587 = vrot.lane.b32.xlu1 %v827_v3, %s859_s29 }
 0x901   : > { %v829_v5 = vpop.eup %828 }
 0x902   : > { %v582_v6 = vadd.f32 1.0, %v829_v5 }
 0x904   : > { %v583_v7 = vmul.f32 0.5, %v582_v6 }
 0x906   : > { %v585_v10 = vmul.f32 %v583_v7, %v492_v58 }
 0x972   : > { %v588_v8 = vpop.permute.xlu1 %587 }
 0x973   : > { %v590_v9 = vmul.f32 %v588_v8, %v583_v7 }
 0x975   : > { %592 = vrot.lane.b32.xlu0 %v590_v9, %s860_s30 }
 0x9e7   : > { %v593_v11 = vpop.permute.xlu0 %592 }
 0x9e8   : > { %v595_v12 = vadd.f32 %v593_v11, %v585_v10 }
 0x9ea   : > { %830 = vtanh.f32 %v595_v12 }
 0x9f7   : > { %v831_v13 = vpop.eup %830 }
 0x9f8   : > { %598 = vrot.lane.b32.xlu1 %v831_v13, %s859_s29 }
 0x9fc   : > { %610 = vrot.lane.b32.xlu1 %v595_v12, %s861_s3 }
 0xa6a   : > { %v599_v14 = vpop.permute.xlu1 %598 }
 0xa6b   : > { %v601_v15 = vmul.f32 %v599_v14, %v583_v7 }
 0xa6d   : > { %603 = vrot.lane.b32.xlu0 %v601_v15, %s860_s30 }
 0xa6e   : > { %v611_v16 = vpop.permute.xlu1 %610 }
 0xa6f   : > { %613 = vst.msk [vmem:[#allocation3] sm:$0x3] %vm297_vm3, %v611_v16 }
 0xadf   : > { %v604_v17 = vpop.permute.xlu0 %603 }
 0xae0   : > { %711 = vst.msk [vmem:[%s903_s20 + $0x6] sm:$0x3] %vm297_vm3, %v604_v17  ;;  %608 = vst.msk [vmem:[#allocation2] sm:$0x3] %vm297_vm3, %v604_v17 }
 0xae1 PF: > { %s12_s11 = sadd.s32 1, %s854_s11   ;;  %s1006_s9 = smov %s850_s10 }
 0xae2   : > { %p9_p6 = scmp.ge.s32.totalorder %s12_s11, 4   ;;  %s1007_s10 = smov %s1009_s12 }
 0xae4   :  { %11 = sbr.rel (!%p9_p6) target bundleno = 2 (0x2), region = 68 }

// kernel: asr_lstm_forward.9
= control target key start
LH: loop header
LB: loop body
LE: loop exit
PB: predicated region body
PF: predicated region fallthrough
CT: control target
= control target key end

     0   :  { %vm27_vm0 = vcmask 261120   ;;  %vm109_vm1 = vcmask 64512   ;;  %s185_s1 = inlined_call_operand.vmem [shape: f32[32,8], index: 1, kind: input, shape index: {}]   ;;  %s186_s0 = inlined_call_operand.vmem [shape: f32[16,32], index: 0, kind: input, shape index: {}]   ;;  %s187_s2 = inlined_call_operand.vmem [shape: f32[1,8], index: 2, kind: input, shape index: {}]   ;;  %s188_s3 = inlined_call_operand.vmem [shape: f32[16,8], index: 3, kind: output, shape index: {}]  }
   0x1   :  { %v19_v0 = vld [vmem:[%s185_s1 + $0x18] sm:$0xff]  ;;  %v18_v1 = vld [vmem:[%s185_s1 + $0x10] sm:$0xff]  ;;  %v14_v2 = vld [vmem:[%s186_s0] sm:$0xff] }
   0x2   :  { %125 = vmatprep.subr.mxu0 %v19_v0  ;;  %v17_v3 = vld [vmem:[%s185_s1 + $0x8] sm:$0xff]  ;;  %133 = vmatprep.mubr.msk.f32.mxu0 %vm27_vm0, %v14_v2  ;;  %v16_v4 = vld [vmem:[%s185_s1] sm:$0xff] }
   0x3   :  { %126 = vmatpush3.msra.mxu0 %v19_v0  ;;  %v15_v5 = vld [vmem:[%s186_s0 + $0x8] sm:$0xff]  ;;  %v116_v6 = vld [vmem:[%s187_s2] ss:$0 sm:$0xff] }
   0x4   :  { %127 = vmatprep.subr.mxu0 %v18_v1 }
   0x5   :  { %128 = vmatpush3.msra.mxu0 %v18_v1 }
   0x6   :  { %129 = vmatprep.subr.mxu0 %v17_v3 }
   0x7   :  { %130 = vmatpush3.msra.mxu0 %v17_v3 }
   0x8   :  { %131 = vmatprep.subr.mxu0 %v16_v4 }
   0x9   :  { %132 = vmatpush3.msra.mxu0 %v16_v4 }
   0xa   :  { %134 = vmatmul.mubr.msk.f32.vlgmr.msra.gmra.mxu0 %vm27_vm0, %v15_v5 }
  0xca   :  { %v135_v7 = vpop.f32.mrf.mxu0 }
  0xcb   :  { %v106_v8 = vadd.f32 %v135_v7, %v116_v6 }
  0xcc   :  { %v100_v9 = vpop.f32.mrf.mxu0 }
  0xcd   :  { %111 = vst.msk [vmem:[%s188_s3 + $0x8] sm:$0xff] %vm109_vm1, %v106_v8  ;;  %v101_v10 = vadd.f32 %v116_v6, %v100_v9 }
  0xcf   :  { %110 = vst.msk [vmem:[%s188_s3] sm:$0xff] %vm109_vm1, %v101_v10 }

</bundles_post_ra>
